<compile_context>
chip_gen: v5e
topology: v5e:2x2
jax: 0.10.0
libtpu: 0.0.40
codegen_flags: <defaults>
</compile_context>

<pallas_src>
import functools

import jax
import jax.numpy as jnp
import numpy as np
from jax.experimental import pallas as pl
from jax.experimental.pallas import tpu as pltpu

EPS = 1e-5
MOMENTUM = 0.1


def _sep_bn_kernel(x_ref, w_ref, b_ref, rm_ref, rv_ref,
                   y_ref, nrm_ref, nrv_ref, *, eps, momentum, n_rows, tile_c):
    # x_ref : (N, tile_c)     current channel tile (last tile may be ragged/masked)
    # w_ref : (1, Wpad)       whole affine row, VMEM-resident (constant index_map)
    # rm/rv : (1, 1, tile_c)  row `time` of the stacked running buffers
    c = pl.program_id(0)
    off = pl.multiple_of(c * tile_c, 128)

    x = x_ref[...].astype(jnp.float32)                          # single upcast
    mean = jnp.mean(x, axis=0, keepdims=True)                   # (1, tile_c), XLU reduce
    diff = x - mean
    var_b = jnp.mean(diff * diff, axis=0, keepdims=True)        # biased variance
    inv_std = jax.lax.rsqrt(var_b + eps)                        # EUP

    w = w_ref[:, pl.ds(off, tile_c)]                            # in-VMEM slice, no DMA
    b = b_ref[:, pl.ds(off, tile_c)]
    y_ref[...] = (diff * inv_std * w + b).astype(y_ref.dtype)

    # running-stat update (F.batch_norm uses the UNBIASED variance here)
    bessel = float(n_rows) / float(max(n_rows - 1, 1))
    one_m = 1.0 - momentum
    nrm_ref[0] = one_m * rm_ref[0] + momentum * mean
    nrv_ref[0] = one_m * rv_ref[0] + momentum * (var_b * bessel)


def _vmem_budgets():
    """(x-block byte budget, vmem_limit cap) per TPU generation."""
    try:
        cap = pltpu.get_tpu_info().vmem_capacity_bytes
    except Exception:
        cap = 0
    if cap >= 96 * 2 ** 20:            # v5e / v6e: 128 MiB physical VMEM
        return 8 * 2 ** 20, 64 * 2 ** 20
    # v7x (64 MiB per TensorCore) or unknown: conservative, safe everywhere
    return 4 * 2 ** 20, 48 * 2 ** 20


def _choose_tile_c(C, N, itemsize, block_budget):
    """Largest multiple-of-128 channel tile whose x block fits the byte budget,
    kept to >= 2 grid steps whenever C allows it (so both v7x TCs get work)."""
    c128 = pl.cdiv(C, 128)
    by_budget = max(block_budget // (N * 128 * itemsize), 1)
    tiles = min(c128, by_budget)
    if tiles >= c128 and c128 >= 2:    # would collapse to a single grid step
        tiles = (c128 + 1) // 2
    return int(tiles) * 128


@functools.partial(jax.jit,
                   static_argnames=("time", "max_length", "eps", "momentum"))
def separated_batch_norm_1d(x, weight, bias, running_mean_all, running_var_all,
                            *, time, max_length, eps=EPS, momentum=MOMENTUM):
    """Forward of SeparatedBatchNorm1d in training mode.

    x:              (N, C)
    weight, bias:   (C,)
    running_*_all:  (max_length, C) stacked per-timestep buffers
    Returns (y, new_running_mean_all, new_running_var_all); only row `time`
    of the running buffers is modified.
    """
    # TODO(synk): `time` must be a static Python int (the PyTorch module resolves
    # a named buffer per timestep, so it is static there too); traced time is
    # unsupported.
    if time >= max_length:
        time = max_length - 1

    N, C = x.shape
    T = max_length
    assert running_mean_all.shape == (T, C) and running_var_all.shape == (T, C)

    itemsize = x.dtype.itemsize
    block_budget, limit_cap = _vmem_budgets()
    tile_c = _choose_tile_c(C, N, itemsize, block_budget)
    num_tiles = pl.cdiv(C, tile_c)
    grid = (num_tiles,)

    # Affine params: tiny (C,) vectors; pad to the tile grid so the in-kernel
    # dynamic slice is always in bounds.  x itself is NOT padded: the ragged
    # last channel tile is handled by Pallas masked loads/stores.
    w_cols = num_tiles * tile_c
    w2 = jnp.pad(weight.astype(jnp.float32), (0, w_cols - C)).reshape(1, w_cols)
    b2 = jnp.pad(bias.astype(jnp.float32), (0, w_cols - C)).reshape(1, w_cols)

    # Stacked running buffers: metadata-only reshape, no pad / no copy. Row
    # `time` is selected in the index_map and written back via aliasing.
    rm3 = running_mean_all.astype(jnp.float32).reshape(T, 1, C)
    rv3 = running_var_all.astype(jnp.float32).reshape(T, 1, C)

    # VMEM accounting: double-buffered x-in + y-out blocks, resident w/b rows,
    # small per-step running-stat tiles; clamped per generation with headroom.
    blk = N * tile_c * itemsize
    needed = 4 * blk + 2 * w_cols * 4 + 8 * tile_c * 4
    vmem_limit = int(min(limit_cap, max(32 * 2 ** 20, needed + (4 << 20))))
    vmem_limit = int(max(vmem_limit, needed + (2 << 20)))

    x_spec = pl.BlockSpec((N, tile_c), lambda c: (0, c))
    wb_spec = pl.BlockSpec((1, w_cols), lambda c: (0, 0))   # fetched once, stays resident
    run_spec = pl.BlockSpec((1, 1, tile_c), lambda c: (time, 0, c))

    y, nrm3, nrv3 = pl.pallas_call(
        functools.partial(_sep_bn_kernel, eps=eps, momentum=momentum,
                          n_rows=N, tile_c=tile_c),
        grid=grid,
        in_specs=[x_spec, wb_spec, wb_spec, run_spec, run_spec],
        out_specs=(x_spec, run_spec, run_spec),
        out_shape=(
            jax.ShapeDtypeStruct((N, C), x.dtype),
            jax.ShapeDtypeStruct((T, 1, C), jnp.float32),
            jax.ShapeDtypeStruct((T, 1, C), jnp.float32),
        ),
        # Write only the updated timestep row back into the stacked buffers;
        # aliasing keeps every other row intact (no full-buffer rewrite).
        input_output_aliases={3: 1, 4: 2},
        compiler_params=pltpu.CompilerParams(
            dimension_semantics=("parallel",),
            vmem_limit_bytes=vmem_limit,
        ),
    )(x, w2, b2, rm3, rv3)

    return y, nrm3.reshape(T, C), nrv3.reshape(T, C)


def _reference_np(x, weight, bias, rm_all, rv_all, time, max_length, eps, momentum):
    if time >= max_length:
        time = max_length - 1
    xf = x.astype(np.float64)
    mean = xf.mean(axis=0)
    var_b = xf.var(axis=0)
    n = xf.shape[0]
    var_u = var_b * (n / max(n - 1, 1))
    y = (xf - mean) / np.sqrt(var_b + eps) * weight + bias
    new_rm = rm_all.astype(np.float64).copy()
    new_rv = rv_all.astype(np.float64).copy()
    new_rm[time] = (1.0 - momentum) * new_rm[time] + momentum * mean
    new_rv[time] = (1.0 - momentum) * new_rv[time] + momentum * var_u
    return (y.astype(x.dtype),
            new_rm.astype(np.float32),
            new_rv.astype(np.float32))


if __name__ == "__main__":
    def run_case(batch, num_features, max_length, time, key):
        kx, kw = jax.random.split(key)
        x = jax.random.normal(kx, (batch, num_features), dtype=jnp.float32)
        # reset_parameters(): weight ~ U[0,1), bias = 0, running_mean = 0, running_var = 1
        weight = jax.random.uniform(kw, (num_features,), dtype=jnp.float32)
        bias = jnp.zeros((num_features,), dtype=jnp.float32)
        rm_all = jnp.zeros((max_length, num_features), dtype=jnp.float32)
        rv_all = jnp.ones((max_length, num_features), dtype=jnp.float32)

        y, new_rm, new_rv = separated_batch_norm_1d(
            x, weight, bias, rm_all, rv_all, time=time, max_length=max_length)
        jax.block_until_ready((y, new_rm, new_rv))

        y_r, rm_r, rv_r = _reference_np(
            np.asarray(x), np.asarray(weight), np.asarray(bias),
            np.asarray(rm_all), np.asarray(rv_all),
            time, max_length, EPS, MOMENTUM)
        np.testing.assert_allclose(np.asarray(y), y_r, rtol=1e-5, atol=1e-5)
        np.testing.assert_allclose(np.asarray(new_rm), rm_r, rtol=1e-5, atol=1e-6)
        np.testing.assert_allclose(np.asarray(new_rv), rv_r, rtol=1e-5, atol=1e-6)

    key = jax.random.PRNGKey(0)
    k0, k1, k2 = jax.random.split(key, 3)
    # lane-dense, multi-tile config (exercises in-kernel weight-row slicing + 2-tile grid)
    run_case(batch=8, num_features=256, max_length=8, time=3, key=k0)
    # small-C fallback (single ragged tile + time clamp)
    run_case(batch=8, num_features=32, max_length=4, time=5, key=k1)
    # non-multiple-of-128 C with >1 tile (ragged LAST tile, masked stores)
    run_case(batch=4, num_features=200, max_length=3, time=1, key=k2)

    print("KERNEL_OK")
</pallas_src>

<mosaic_0001>
module attributes {stable_mosaic.version = 11 : i64} {
  func.func @_sep_bn_kernel(%arg0: i32, %arg1: memref<8x128xf32, #tpu.memory_space<vmem>>, %arg2: memref<1x256xf32, #tpu.memory_space<vmem>>, %arg3: memref<1x256xf32, #tpu.memory_space<vmem>>, %arg4: memref<1x1x128xf32, #tpu.memory_space<vmem>>, %arg5: memref<1x1x128xf32, #tpu.memory_space<vmem>>, %arg6: memref<8x128xf32, #tpu.memory_space<vmem>>, %arg7: memref<1x1x128xf32, #tpu.memory_space<vmem>>, %arg8: memref<1x1x128xf32, #tpu.memory_space<vmem>>) attributes {dimension_semantics = [#tpu.dimension_semantics<parallel>], iteration_bounds = array<i64: 2>, scalar_prefetch = 0 : i64, scratch_operands = 0 : i64, tpu.core_type = #tpu.core_type<tc>, window_params = [{transform_indices = @transform_0, window_bounds = array<i64: 8, 128>}, {pipeline_mode = #tpu.pipeline_mode<synchronous>, transform_indices = @transform_1, window_bounds = array<i64: 1, 256>}, {pipeline_mode = #tpu.pipeline_mode<synchronous>, transform_indices = @transform_2, window_bounds = array<i64: 1, 256>}, {transform_indices = @transform_3, window_bounds = array<i64: 1, 1, 128>}, {transform_indices = @transform_4, window_bounds = array<i64: 1, 1, 128>}, {transform_indices = @transform_5, window_bounds = array<i64: 8, 128>}, {transform_indices = @transform_6, window_bounds = array<i64: 1, 1, 128>}, {transform_indices = @transform_7, window_bounds = array<i64: 1, 1, 128>}]} {
    %c128_i32 = arith.constant 128 : i32
    %0 = arith.muli %arg0, %c128_i32 : i32
    %1 = tpu.assume_multiple %0, 128 : i32
    %c0 = arith.constant 0 : index
    %c0_0 = arith.constant 0 : index
    %2 = vector.load %arg1[%c0, %c0_0] : memref<8x128xf32, #tpu.memory_space<vmem>>, vector<8x128xf32>
    %cst = arith.constant dense<0.000000e+00> : vector<128xf32>
    %3 = vector.multi_reduction <add>, %2, %cst [0] : vector<8x128xf32> to vector<128xf32>
    %4 = vector.shape_cast %3 : vector<128xf32> to vector<1x128xf32>
    %cst_1 = arith.constant 8.000000e+00 : f32
    %5 = vector.broadcast %cst_1 : f32 to vector<1x128xf32>
    %6 = arith.divf %4, %5 : vector<1x128xf32>
    %7 = vector.broadcast %6 : vector<1x128xf32> to vector<8x128xf32>
    %8 = arith.subf %2, %7 : vector<8x128xf32>
    %9 = arith.mulf %8, %8 : vector<8x128xf32>
    %cst_2 = arith.constant dense<0.000000e+00> : vector<128xf32>
    %10 = vector.multi_reduction <add>, %9, %cst_2 [0] : vector<8x128xf32> to vector<128xf32>
    %11 = vector.shape_cast %10 : vector<128xf32> to vector<1x128xf32>
    %cst_3 = arith.constant 8.000000e+00 : f32
    %12 = vector.broadcast %cst_3 : f32 to vector<1x128xf32>
    %13 = arith.divf %11, %12 : vector<1x128xf32>
    %cst_4 = arith.constant 9.99999974E-6 : f32
    %14 = vector.broadcast %cst_4 : f32 to vector<1x128xf32>
    %15 = arith.addf %13, %14 : vector<1x128xf32>
    %16 = math.rsqrt %15 : vector<1x128xf32>
    %c0_5 = arith.constant 0 : index
    %17 = arith.index_cast %1 : i32 to index
    %18 = vector.load %arg2[%c0_5, %17] : memref<1x256xf32, #tpu.memory_space<vmem>>, vector<1x128xf32>
    %c0_6 = arith.constant 0 : index
    %19 = arith.index_cast %1 : i32 to index
    %20 = vector.load %arg3[%c0_6, %19] : memref<1x256xf32, #tpu.memory_space<vmem>>, vector<1x128xf32>
    %21 = vector.broadcast %16 : vector<1x128xf32> to vector<8x128xf32>
    %22 = arith.mulf %8, %21 : vector<8x128xf32>
    %23 = vector.broadcast %18 : vector<1x128xf32> to vector<8x128xf32>
    %24 = arith.mulf %22, %23 : vector<8x128xf32>
    %25 = vector.broadcast %20 : vector<1x128xf32> to vector<8x128xf32>
    %26 = arith.addf %24, %25 : vector<8x128xf32>
    %c0_7 = arith.constant 0 : index
    %c0_8 = arith.constant 0 : index
    %27 = vector.load %arg6[%c0_7, %c0_8] : memref<8x128xf32, #tpu.memory_space<vmem>>, vector<8x128xf32>
    tpu.vector_store %arg6[%c0_7, %c0_8], %26 {strides = array<i32>} : memref<8x128xf32, #tpu.memory_space<vmem>>, vector<8x128xf32>,
    %c0_9 = arith.constant 0 : index
    %c0_10 = arith.constant 0 : index
    %c0_11 = arith.constant 0 : index
    %28 = vector.load %arg4[%c0_9, %c0_10, %c0_11] : memref<1x1x128xf32, #tpu.memory_space<vmem>>, vector<1x1x128xf32>
    %29 = vector.shape_cast %28 : vector<1x1x128xf32> to vector<1x128xf32>
    %cst_12 = arith.constant 0.899999976 : f32
    %30 = vector.broadcast %cst_12 : f32 to vector<1x128xf32>
    %31 = arith.mulf %30, %29 : vector<1x128xf32>
    %cst_13 = arith.constant 1.000000e-01 : f32
    %32 = vector.broadcast %cst_13 : f32 to vector<1x128xf32>
    %33 = arith.mulf %32, %6 : vector<1x128xf32>
    %34 = arith.addf %31, %33 : vector<1x128xf32>
    %c0_14 = arith.constant 0 : index
    %c0_15 = arith.constant 0 : index
    %c0_16 = arith.constant 0 : index
    %35 = vector.load %arg7[%c0_14, %c0_15, %c0_16] : memref<1x1x128xf32, #tpu.memory_space<vmem>>, vector<1x1x128xf32>
    %36 = vector.shape_cast %35 : vector<1x1x128xf32> to vector<1x128xf32>
    %37 = vector.shape_cast %34 : vector<1x128xf32> to vector<1x1x128xf32>
    tpu.vector_store %arg7[%c0_14, %c0_15, %c0_16], %37 {strides = array<i32>} : memref<1x1x128xf32, #tpu.memory_space<vmem>>, vector<1x1x128xf32>,
    %c0_17 = arith.constant 0 : index
    %c0_18 = arith.constant 0 : index
    %c0_19 = arith.constant 0 : index
    %38 = vector.load %arg5[%c0_17, %c0_18, %c0_19] : memref<1x1x128xf32, #tpu.memory_space<vmem>>, vector<1x1x128xf32>
    %39 = vector.shape_cast %38 : vector<1x1x128xf32> to vector<1x128xf32>
    %cst_20 = arith.constant 0.899999976 : f32
    %40 = vector.broadcast %cst_20 : f32 to vector<1x128xf32>
    %41 = arith.mulf %40, %39 : vector<1x128xf32>
    %cst_21 = arith.constant 1.14285719 : f32
    %42 = vector.broadcast %cst_21 : f32 to vector<1x128xf32>
    %43 = arith.mulf %13, %42 : vector<1x128xf32>
    %cst_22 = arith.constant 1.000000e-01 : f32
    %44 = vector.broadcast %cst_22 : f32 to vector<1x128xf32>
    %45 = arith.mulf %44, %43 : vector<1x128xf32>
    %46 = arith.addf %41, %45 : vector<1x128xf32>
    %c0_23 = arith.constant 0 : index
    %c0_24 = arith.constant 0 : index
    %c0_25 = arith.constant 0 : index
    %47 = vector.load %arg8[%c0_23, %c0_24, %c0_25] : memref<1x1x128xf32, #tpu.memory_space<vmem>>, vector<1x1x128xf32>
    %48 = vector.shape_cast %47 : vector<1x1x128xf32> to vector<1x128xf32>
    %49 = vector.shape_cast %46 : vector<1x128xf32> to vector<1x1x128xf32>
    tpu.vector_store %arg8[%c0_23, %c0_24, %c0_25], %49 {strides = array<i32>} : memref<1x1x128xf32, #tpu.memory_space<vmem>>, vector<1x1x128xf32>,
    return
  }
  func.func @transform_0(%arg0: i32) -> (i32, i32) {
    %c0_i32 = arith.constant 0 : i32
    %c0_i32_0 = arith.constant 0 : i32
    return %c0_i32, %arg0 : i32, i32
  }
  func.func @transform_1(%arg0: i32) -> (i32, i32) {
    %c0_i32 = arith.constant 0 : i32
    %c0_i32_0 = arith.constant 0 : i32
    %c0_i32_1 = arith.constant 0 : i32
    return %c0_i32, %c0_i32_0 : i32, i32
  }
  func.func @transform_2(%arg0: i32) -> (i32, i32) {
    %c0_i32 = arith.constant 0 : i32
    %c0_i32_0 = arith.constant 0 : i32
    %c0_i32_1 = arith.constant 0 : i32
    return %c0_i32, %c0_i32_0 : i32, i32
  }
  func.func @transform_3(%arg0: i32) -> (i32, i32, i32) {
    %c3_i32 = arith.constant 3 : i32
    %c0_i32 = arith.constant 0 : i32
    %c0_i32_0 = arith.constant 0 : i32
    return %c3_i32, %c0_i32, %arg0 : i32, i32, i32
  }
  func.func @transform_4(%arg0: i32) -> (i32, i32, i32) {
    %c3_i32 = arith.constant 3 : i32
    %c0_i32 = arith.constant 0 : i32
    %c0_i32_0 = arith.constant 0 : i32
    return %c3_i32, %c0_i32, %arg0 : i32, i32, i32
  }
  func.func @transform_5(%arg0: i32) -> (i32, i32) {
    %c0_i32 = arith.constant 0 : i32
    %c0_i32_0 = arith.constant 0 : i32
    return %c0_i32, %arg0 : i32, i32
  }
  func.func @transform_6(%arg0: i32) -> (i32, i32, i32) {
    %c3_i32 = arith.constant 3 : i32
    %c0_i32 = arith.constant 0 : i32
    %c0_i32_0 = arith.constant 0 : i32
    return %c3_i32, %c0_i32, %arg0 : i32, i32, i32
  }
  func.func @transform_7(%arg0: i32) -> (i32, i32, i32) {
    %c3_i32 = arith.constant 3 : i32
    %c0_i32 = arith.constant 0 : i32
    %c0_i32_0 = arith.constant 0 : i32
    return %c3_i32, %c0_i32, %arg0 : i32, i32, i32
  }
}

</mosaic_0001>

<bundles_post_ra>
// kernel: separated_batch_norm_1d.1
= control target key start
LH: loop header
LB: loop body
LE: loop exit
PB: predicated region body
PF: predicated region fallthrough
CT: control target
= control target key end

     0   :  { %s846_s0 = inlined_call_operand.vmem [shape: f32[8,256], index: 0, kind: input, shape index: {}]   ;;  %s847_s1 = inlined_call_operand.vmem [shape: f32[1,256], index: 1, kind: input, shape index: {}]   ;;  %s848_s2 = inlined_call_operand.vmem [shape: f32[1,256], index: 2, kind: input, shape index: {}]   ;;  %s849_s3 = inlined_call_operand.vmem [shape: f32[8,1,256], index: 3, kind: input, shape index: {}, may-alias: {3,6}]   ;;  %s850_s4 = inlined_call_operand.vmem [shape: f32[8,1,256], index: 4, kind: input, shape index: {}, may-alias: {4,7}]   ;;  %s851_s5 = inlined_call_operand.hbm [shape: f32[8,256], index: 5, kind: output, shape index: {0}]   ;;  %s852_s6 = inlined_call_operand.vmem [shape: f32[8,1,256], index: 6, kind: output, shape index: {1}, may-alias: {3,6}]   ;;  %s853_s7 = inlined_call_operand.vmem [shape: f32[8,1,256], index: 7, kind: output, shape index: {2}, may-alias: {4,7}]  }
   0x1   :  { %854 = sst [smem:[#allocation5_spill]] %s846_s0 }
   0x2   :  { %13 = vsyncpa [#allocation3], 0 }
   0x3   :  { %15 = vsyncpa [#allocation3 + $0x1], 0  ;;  %s721_s24 = smov 0   ;;  %s723_s25 = smov 0  }
   0x4   :  { %s725_s26 = smov 0   ;;  %s727_s27 = smov 0  }
   0x5 LB: > { %s742_s28 = sadd.s32 4294967295, %s678_s27   ;;  %s555_s29 = sadd.s32 4294967294, %s678_s27   ;;  %s678_s27 = sphi %s727_s27, %s861_s27   ;;  %s674_s26 = sphi %s725_s26, %s860_s26   ;;  %s670_s25 = sphi %s723_s25, %s859_s25   ;;  %s666_s24 = sphi %s721_s24, %s858_s24  }
   0x6   : > { %s746_s30 = sadd.s32 1, %s678_s27   ;;  %s148_s8 = sadd.s32 1, %s674_s26 }
   0x7   : > { %s145_s9 = ssub.s32 %s678_s27, %s746_s30  ;;  %p158_p0 = scmp.ne.s32.totalorder %s674_s26, %s670_s25 }
   0x8   : > { %p146_p1 = scmp.eq.s32.totalorder %s145_s9, 0  ;;  %p159_p2 = scmp.eq.s32.totalorder %s742_s28, 1 }
   0x9   : > { %p164_p3 = scmp.ne.s32.totalorder %s670_s25, %s666_s24  ;;  %p165_p4 = scmp.eq.s32.totalorder %s555_s29, 1 }
   0xa   : > { %s757_s10 = scalar_select %p146_p1, %s674_s26, %s148_s8  }
   0xb   : > { %p759_p5 = por %p159_p2, %p158_p0  ;;  %p763_p6 = por %p165_p4, %p164_p3 }
   0xc   : > { %p558_p7 = scmp.ge.s32.totalorder %s678_s27, 1  ;;  %p262_p8 = scmp.lt.s32.totalorder %s678_s27, 3 }
   0xe   : > { %p263_p9 = pnand %p558_p7, %p262_p8 }
   0xf   : > { %p309_p10 = scmp.lt.s32.totalorder (!%p263_p9), %s742_s28, 1  ;;  %s561_s13 = sshll.u32 (!%p263_p9), %s742_s28, 7 }
  0x10   : > { %266 = sbr.rel (%p263_p9) target bundleno = 87 (0x57), region = 40  ;;  %s771_s14 = sshra.s32 (!%p263_p9), %s561_s13, 7 }
  0x11   : > { %s367_s18 = scalar_lea.vmem (!%p263_p9), %s847_s1, %s771_s14  ;;  %s369_s21 = scalar_lea.vmem (!%p263_p9), %s848_s2, %s771_s14 }
  0x12   : > { %s857_s0 = sld [smem:[#allocation5_spill]] (!%p263_p9)  ;;  %s567_s19 = sshll.u32 (!%p263_p9), %s742_s28, 3 }
  0x13   : > { %s636_s14 = scalar_lea.hbm (!%p263_p9), %s851_s5, 16 }
  0x15   : > { %v680_v0 = vmov 8.0   ;;  %s774_s15 = scalar_select %p309_p10, %s742_s28, 1  ;;  %v610_v40 = vld [vmem:[%s367_s18] ss:$0 sm:$0xff] }
  0x16   : > { %612 = vrcp.f32 %v680_v0  ;;  %v611_v43 = vld [vmem:[%s369_s21] ss:$0 sm:$0xff] }
  0x17   : > { %s560_s22 = sshll.u32 %s774_s15, 3  ;;  %s478_s16 = scalar_lea.vmem %s849_s3, %s774_s15 }
  0x18   : > { %s312_s8 = scalar_lea.vmem %s857_s0, %s560_s22  ;;  %v562_v20 = vld [vmem:[%s478_s16 + $0x6] sm:$0x1]  ;;  %s482_s20 = scalar_lea.vmem %s852_s6, %s774_s15 }
  0x19   : > { %v330_v2 = vld [vmem:[%s312_s8] sm:$0xff]  ;;  %v382_v21 = vmul.f32 0.9, %v562_v20  ;;  %s480_s29 = scalar_lea.vmem %s850_s4, %s774_s15  ;;  %s484_s13 = scalar_lea.vmem %s853_s7, %s774_s15 }
  0x1a   : > { %v331_v3 = vrot.slane %v330_v2, 4  ;;  %v564_v27 = vld [vmem:[%s480_s29 + $0x6] sm:$0x1]  ;;  %s294_s16 = sand.u32 1, %s670_s25   ;;  %s411_s29 = scalar_lea.hbm %s851_s5, %s567_s19 }
  0x1b   : > { %v387_v30 = vmul.f32 0.9, %v564_v27  ;;  %s559_s17 = sshll.u32 %s294_s16, 3  ;;  %s415_s0 = sshll.u32 %s411_s29, 4  ;;  %s416_s0 = int_to_ptr.hbm [resolvable:$true] %s415_s0 }
  0x1c   : > { %v613_v1 = vpop.eup %612  ;;  %v332_v5 = vadd.f32 %v331_v3, %v330_v2  ;;  %s296_s28 = scalar_lea.vmem [#allocation2], %s559_s17  ;;  %s393_s18 = scalar_lea.sflag [#allocation3], %s294_s16 }
  0x1d   : > { %v338_v4 = vmul.f32 8.0, %v613_v1  ;;  %vm342_vm0 = vweird.f32 %v613_v1 }
  0x1e   : > { %v333_v7 = vrot.slane %v332_v5, 2 }
  0x1f   : > { %v339_v6 = vsub.f32 1.0, %v338_v4 }
  0x20   : > { %v334_v9 = vadd.f32 %v333_v7, %v332_v5 }
  0x21   : > { %v340_v8 = vmul.f32 %v613_v1, %v339_v6 }
  0x22   : > { %v335_v11 = vrot.slane %v334_v9, 1 }
  0x23   : > { %v341_v10 = vadd.f32 %v613_v1, %v340_v8 }
  0x24   : > { %v336_v13 = vadd.f32 %v335_v11, %v334_v9 }
  0x25   : > { %v343_v12 = vsel %vm342_vm0, %v613_v1, %v341_v10 }
  0x26   : > { %v344_v14 = vmul.f32 %v343_v12, %v336_v13 }
  0x28   : > { %v345_v15 = vsub.f32 %v330_v2, %v344_v14  ;;  %v383_v22 = vmul.f32 0.1, %v344_v14 }
  0x2a   : > { %v346_v16 = vmul.f32 %v345_v15, %v345_v15  ;;  %v384_v24 = vadd.f32 %v383_v22, %v382_v21 }
  0x2c   : > { %v347_v17 = vrot.slane %v346_v16, 4  ;;  %563 = vst [vmem:[%s482_s20 + $0x6] sm:$0x1] %v384_v24  ;;  %s630_s20 = sshra.s32 %s416_s0, 4  ;;  %s631_s20 = int_to_ptr.hbm [resolvable:$true] %s630_s20 }
  0x2d   : > { %s632_s19 = scalar_lea.hbm %s631_s20, 8  ;;  %p637_p0 = scmp.lt.s32.totalorder %s631_s20, %s851_s5 }
  0x2e   : > { %v348_v18 = vadd.f32 %v347_v17, %v346_v16  ;;  %p633_p11 = scmp.ne.s32.totalorder %s631_s20, %s632_s19  ;;  %p638_p1 = scmp.lt.s32.totalorder %s636_s14, %s632_s19 }
  0x30   : > { %v349_v19 = vrot.slane %v348_v18, 2  ;;  %p634_p12 = pnand %p633_p11, %p759_p5  ;;  %p639_p2 = por %p638_p1, %p637_p0 }
  0x32   : > { %v350_v23 = vadd.f32 %v349_v19, %v348_v18  ;;  %p635_p13 = pneg %p634_p12 }
  0x34   : > { %v351_v25 = vrot.slane %v350_v23, 1  ;;  %p640_p3 = pnand %p639_p2, %p635_p13 }
  0x36   : > { %v352_v26 = vadd.f32 %v351_v25, %v350_v23 }
  0x38   : > { %v353_v28 = vmul.f32 %v352_v26, %v343_v12 }
  0x3a   : > { %v354_v29 = vadd.f32 1e-05, %v353_v28  ;;  %v388_v31 = vmul.f32 1.1428572, %v353_v28 }
  0x3c   : > { %614 = vrsqrt.f32 %v354_v29  ;;  %v389_v32 = vmul.f32 0.1, %v388_v31  ;;  %vm361_vm1 = vweird.f32 %v354_v29 }
  0x3e   : > { %v390_v33 = vadd.f32 %v389_v32, %v387_v30 }
  0x40   : > { %565 = vst [vmem:[%s484_s13 + $0x6] sm:$0x1] %v390_v33  ;;  %s413_s13 = sshll.u32 %s296_s28, 4  ;;  %s414_s13 = int_to_ptr.vmem [resolvable:$true] %s413_s13 }
  0x42   : > { %v615_v34 = vpop.eup %614 }
  0x43   : > { %v356_v35 = vmul.f32 %v615_v34, %v354_v29  ;;  %vm362_vm2 = vweird.f32 %v615_v34 }
  0x44   : > { %vm363_vm3 = vmor %vm361_vm1, %vm362_vm2 }
  0x45   : > { %v357_v36 = vmul.f32 %v615_v34, %v356_v35 }
  0x47   : > { %v358_v37 = vmul.f32 0.5, %v357_v36 }
  0x49   : > { %v359_v38 = vsub.f32 1.5, %v358_v37 }
  0x4b   : > { %v360_v39 = vmul.f32 %v615_v34, %v359_v38 }
  0x4d   : > { %v364_v41 = vsel %vm363_vm3, %v615_v34, %v360_v39 }
  0x4e   : > { %v371_v42 = vmul.f32 %v364_v41, %v345_v15 }
  0x50   : > { %v375_v44 = vmul.f32 %v610_v40, %v371_v42 }
  0x52   : > { %v379_v45 = vadd.f32 %v611_v43, %v375_v44 }
  0x54   : > { %380 = vst [vmem:[%s296_s28] sm:$0xff] %v379_v45 }
  0x55   : > { %643 = shalt.err (!%p640_p3)
}
  0x56   : > { %570 = dma.vmem_to_hbm [thread:$0]  (%p759_p5), %s414_s13, 128, %s416_s0, %s393_s18  }
  0x57 PF: > { %p576_p4 = scmp.ge.s32.totalorder %s678_s27, 2  ;;  %s433_s16 = sand.u32 1, %s666_s24  }
  0x58   : > { %s434_s23 = scalar_lea.sflag [#allocation3], %s433_s16 }
  0x59   : > { %p573_p7 = pnand %p576_p4, %p763_p6 }
  0x5b   : > { %p574_p8 = pneg %p573_p7 }
  0x5d   : > { %661 = dma.done.wait (%p574_p8), %s434_s23, 128  }
  0x5e   : > { %663 = vsyncadd (%p574_p8), %s434_s23, 4294967168  ;;  %p18_p9 = scmp.ge.s32.totalorder %s746_s30, 4   ;;  %s858_s24 = smov %s670_s25 }
  0x5f   : > { %s859_s25 = smov %s674_s26  ;;  %s860_s26 = smov %s757_s10 }
  0x60   : > { %s861_s27 = smov %s746_s30  ;;  %20 = sbr.rel (!%p18_p9) target bundleno = 5 (0x5), region = 107 }
  0x65   :  { %454 = vsyncpa [#allocation3], 1 }
  0x66   :  { %456 = vsyncpa [#allocation3 + $0x1], 1 }

</bundles_post_ra>
